<compile_context>
chip_gen: v7x
topology: tpu7x:2x2x1
jax: 0.10.0
libtpu: 0.0.40
codegen_flags: <defaults>
</compile_context>

<pallas_src>
import functools

import jax
import jax.numpy as jnp
from jax.experimental import pallas as pl
from jax.experimental.pallas import tpu as pltpu

CLASS_NUM = 5
GAMMA = 2.0
ALPHA = (0.03, 0.07, 0.2, 0.35, 0.35)
# TODO(synk): the PyTorch __init__ does torch.tensor(gamma) with gamma=2 and uses it
# as a scalar exponent; gamma is statically 2 here so (1-pt)**gamma is a single multiply.


def _round_up(x, m):
    return (x + m - 1) // m * m


def _focal_loss_kernel(predict_ref, target_ref, out_ref, acc_ref, *,
                       alpha, total_n, reduction):
    i = pl.program_id(0)
    n_tiles = pl.num_programs(0)

    @pl.when(i == 0)
    def _():
        acc_ref[...] = jnp.zeros_like(acc_ref)

    logits = predict_ref[...]            # (C, TN) f32, batch on the lane axis
    tgt = target_ref[...]                # (1, TN) int32
    c, tn = logits.shape

    # one-hot of the target over the class (sublane) axis
    cls_ids = jax.lax.broadcasted_iota(jnp.int32, (c, tn), 0)
    maskf = (cls_ids == tgt).astype(jnp.float32)            # (C, TN)

    # log-softmax over classes, unrolled over the C sublane rows (pure VPU/EUP,
    # no cross-lane XLU reductions)
    m = logits[0:1, :]
    for k in range(1, c):
        m = jnp.maximum(m, logits[k:k + 1, :])              # (1, TN)
    e = jnp.exp(logits - m)                                 # (C, TN)
    sum_e = e[0:1, :]
    logit_t = maskf[0:1, :] * logits[0:1, :]
    alpha_t = alpha[0] * maskf[0:1, :]
    for k in range(1, c):
        sum_e = sum_e + e[k:k + 1, :]
        logit_t = logit_t + maskf[k:k + 1, :] * logits[k:k + 1, :]
        alpha_t = alpha_t + alpha[k] * maskf[k:k + 1, :]

    # logpt = gather(log_softmax, target);  pt = exp(logpt)
    log_pt = (logit_t - m) - jnp.log(sum_e)                 # (1, TN)
    pt = jnp.exp(log_pt)                                    # (1, TN)
    one_minus_pt = 1.0 - pt
    loss = alpha_t * (one_minus_pt * one_minus_pt) * (-log_pt)   # gamma == 2

    # mask out padded batch columns (remainder handling)
    col = jax.lax.broadcasted_iota(jnp.int32, (1, tn), 1) + i * tn
    valid = (col < total_n).astype(jnp.float32)
    acc_ref[...] += loss * valid                            # per-lane VMEM accumulate

    @pl.when(i == n_tiles - 1)
    def _():
        total = jnp.sum(acc_ref[...])                       # single final XLU reduce
        if reduction == "mean":
            out_ref[0, 0] = total / jnp.float32(total_n)
        else:  # 'sum'
            out_ref[0, 0] = total


def multi_ce_focal_loss(predict, target, alpha=ALPHA, *, reduction="mean",
                        max_tile_n=2048):
    """predict: (N, C) logits; target: (N,) int class ids. Returns scalar loss."""
    n, c = predict.shape
    # lane-dense tile: multiple of 128, up to max_tile_n rows per grid step
    tile = min(max_tile_n, _round_up(n, 128))
    padded_n = _round_up(n, tile)

    pred_t = jnp.transpose(predict.astype(jnp.float32))     # (C, N) batch on lanes
    tgt = target.astype(jnp.int32)
    if padded_n != n:
        pred_t = jnp.pad(pred_t, ((0, 0), (0, padded_n - n)))
        tgt = jnp.pad(tgt, (0, padded_n - n))
    tgt2d = tgt.reshape(1, padded_n)

    kernel = functools.partial(
        _focal_loss_kernel,
        alpha=tuple(float(a) for a in alpha),
        total_n=n,
        reduction=reduction,
    )

    out = pl.pallas_call(
        kernel,
        out_shape=jax.ShapeDtypeStruct((1, 1), jnp.float32),
        grid_spec=pltpu.PrefetchScalarGridSpec(
            num_scalar_prefetch=0,
            grid=(padded_n // tile,),
            in_specs=[
                pl.BlockSpec((c, tile), lambda i: (0, i)),   # logits (C, tile)
                pl.BlockSpec((1, tile), lambda i: (0, i)),   # target (1, tile)
            ],
            out_specs=pl.BlockSpec((1, 1), lambda i: (0, 0),
                                   memory_space=pltpu.SMEM),
            scratch_shapes=[pltpu.VMEM((1, tile), jnp.float32)],
        ),
        compiler_params=pltpu.CompilerParams(
            dimension_semantics=("arbitrary",)),   # grid axis is a reduction
    )(pred_t, tgt2d)
    return out[0, 0]


def _reference(predict, target, alpha, gamma=GAMMA, reduction="mean"):
    logp = jax.nn.log_softmax(predict.astype(jnp.float32), axis=1)
    logpt = jnp.take_along_axis(logp, target.reshape(-1, 1), axis=1).reshape(-1)
    pt = jnp.exp(logpt)
    a = jnp.asarray(alpha, jnp.float32)[target]
    fl = a * (1.0 - pt) ** gamma * (-logpt)
    return jnp.mean(fl) if reduction == "mean" else jnp.sum(fl)


if __name__ == "__main__":
    key = jax.random.PRNGKey(0)
    alpha = jnp.asarray(ALPHA, jnp.float32)
    k1, k2, k3, k4 = jax.random.split(key, 4)

    # Small batch (single tile, lane padding masked out).
    n1 = 8
    p1 = jax.random.normal(k1, (n1, CLASS_NUM), dtype=jnp.float32) * 3.0
    t1 = jax.random.randint(k2, (n1,), 0, CLASS_NUM, dtype=jnp.int32)
    out1 = jax.block_until_ready(multi_ce_focal_loss(p1, t1, ALPHA, reduction="mean"))
    ref1 = _reference(p1, t1, alpha, reduction="mean")
    assert jnp.allclose(out1, ref1, rtol=2e-5, atol=1e-5), (out1, ref1)

    # Ragged batch across multiple grid steps (exercises masking + accumulation).
    n2 = 300
    p2 = jax.random.normal(k3, (n2, CLASS_NUM), dtype=jnp.float32) * 3.0
    t2 = jax.random.randint(k4, (n2,), 0, CLASS_NUM, dtype=jnp.int32)
    out2 = jax.block_until_ready(
        multi_ce_focal_loss(p2, t2, ALPHA, reduction="mean", max_tile_n=128))
    ref2 = _reference(p2, t2, alpha, reduction="mean")
    assert jnp.allclose(out2, ref2, rtol=2e-5, atol=1e-5), (out2, ref2)

    print("KERNEL_OK")
</pallas_src>

<mosaic_0001>
module attributes {stable_mosaic.version = 11 : i64} {
  func.func @_focal_loss_kernel(%arg0: i32, %arg1: memref<5x128xf32, #tpu.memory_space<vmem>>, %arg2: memref<1x128xi32, #tpu.memory_space<vmem>>, %arg3: memref<1x1xf32, #tpu.memory_space<smem>>, %arg4: memref<1x128xf32, #tpu.memory_space<vmem>>) attributes {dimension_semantics = [#tpu.dimension_semantics<arbitrary>], iteration_bounds = array<i64: 1>, scalar_prefetch = 0 : i64, scratch_operands = 1 : i64, tpu.core_type = #tpu.core_type<tc>, window_params = [{transform_indices = @transform_0, window_bounds = array<i64: 5, 128>}, {transform_indices = @transform_1, window_bounds = array<i64: 1, 128>}, {transform_indices = @transform_2, window_bounds = array<i64: 1, 1>}]} {
    %c0_i32 = arith.constant 0 : i32
    %0 = arith.cmpi eq, %arg0, %c0_i32 : i32
    %1 = arith.extui %0 : i1 to i32
    %c0_i32_0 = arith.constant 0 : i32
    %2 = arith.cmpi ne, %1, %c0_i32_0 : i32
    scf.if %2 {
      %cst_16 = arith.constant 0.000000e+00 : f32
      %95 = vector.broadcast %cst_16 : f32 to vector<1x128xf32>
      %c0_17 = arith.constant 0 : index
      %c0_18 = arith.constant 0 : index
      %96 = vector.load %arg4[%c0_17, %c0_18] : memref<1x128xf32, #tpu.memory_space<vmem>>, vector<1x128xf32>
      tpu.vector_store %arg4[%c0_17, %c0_18], %95 {strides = array<i32>} : memref<1x128xf32, #tpu.memory_space<vmem>>, vector<1x128xf32>,
    } else {
    }
    %c0 = arith.constant 0 : index
    %c0_1 = arith.constant 0 : index
    %3 = vector.load %arg1[%c0, %c0_1] : memref<5x128xf32, #tpu.memory_space<vmem>>, vector<5x128xf32>
    %c0_2 = arith.constant 0 : index
    %c0_3 = arith.constant 0 : index
    %4 = vector.load %arg2[%c0_2, %c0_3] : memref<1x128xi32, #tpu.memory_space<vmem>>, vector<1x128xi32>
    %5 = tpu.iota {dimensions = array<i32: 0>} : vector<5x128xi32>
    %6 = vector.broadcast %4 : vector<1x128xi32> to vector<5x128xi32>
    %7 = arith.cmpi eq, %5, %6 : vector<5x128xi32>
    %8 = arith.extui %7 : vector<5x128xi1> to vector<5x128xi32>
    %9 = arith.sitofp %8 : vector<5x128xi32> to vector<5x128xf32>
    %10 = vector.extract_strided_slice %3 {offsets = [0, 0], sizes = [1, 128], strides = [1, 1]} : vector<5x128xf32> to vector<1x128xf32>
    %11 = vector.extract_strided_slice %3 {offsets = [1, 0], sizes = [1, 128], strides = [1, 1]} : vector<5x128xf32> to vector<1x128xf32>
    %12 = arith.maximumf %10, %11 : vector<1x128xf32>
    %13 = vector.extract_strided_slice %3 {offsets = [2, 0], sizes = [1, 128], strides = [1, 1]} : vector<5x128xf32> to vector<1x128xf32>
    %14 = arith.maximumf %12, %13 : vector<1x128xf32>
    %15 = vector.extract_strided_slice %3 {offsets = [3, 0], sizes = [1, 128], strides = [1, 1]} : vector<5x128xf32> to vector<1x128xf32>
    %16 = arith.maximumf %14, %15 : vector<1x128xf32>
    %17 = vector.extract_strided_slice %3 {offsets = [4, 0], sizes = [1, 128], strides = [1, 1]} : vector<5x128xf32> to vector<1x128xf32>
    %18 = arith.maximumf %16, %17 : vector<1x128xf32>
    %19 = vector.broadcast %18 : vector<1x128xf32> to vector<5x128xf32>
    %20 = arith.subf %3, %19 : vector<5x128xf32>
    %21 = math.exp %20 : vector<5x128xf32>
    %22 = vector.extract_strided_slice %21 {offsets = [0, 0], sizes = [1, 128], strides = [1, 1]} : vector<5x128xf32> to vector<1x128xf32>
    %23 = vector.extract_strided_slice %9 {offsets = [0, 0], sizes = [1, 128], strides = [1, 1]} : vector<5x128xf32> to vector<1x128xf32>
    %24 = vector.extract_strided_slice %3 {offsets = [0, 0], sizes = [1, 128], strides = [1, 1]} : vector<5x128xf32> to vector<1x128xf32>
    %25 = arith.mulf %23, %24 : vector<1x128xf32>
    %26 = vector.extract_strided_slice %9 {offsets = [0, 0], sizes = [1, 128], strides = [1, 1]} : vector<5x128xf32> to vector<1x128xf32>
    %cst = arith.constant 3.000000e-02 : f32
    %27 = vector.broadcast %cst : f32 to vector<1x128xf32>
    %28 = arith.mulf %27, %26 : vector<1x128xf32>
    %29 = vector.extract_strided_slice %21 {offsets = [1, 0], sizes = [1, 128], strides = [1, 1]} : vector<5x128xf32> to vector<1x128xf32>
    %30 = arith.addf %22, %29 : vector<1x128xf32>
    %31 = vector.extract_strided_slice %9 {offsets = [1, 0], sizes = [1, 128], strides = [1, 1]} : vector<5x128xf32> to vector<1x128xf32>
    %32 = vector.extract_strided_slice %3 {offsets = [1, 0], sizes = [1, 128], strides = [1, 1]} : vector<5x128xf32> to vector<1x128xf32>
    %33 = arith.mulf %31, %32 : vector<1x128xf32>
    %34 = arith.addf %25, %33 : vector<1x128xf32>
    %35 = vector.extract_strided_slice %9 {offsets = [1, 0], sizes = [1, 128], strides = [1, 1]} : vector<5x128xf32> to vector<1x128xf32>
    %cst_4 = arith.constant 7.000000e-02 : f32
    %36 = vector.broadcast %cst_4 : f32 to vector<1x128xf32>
    %37 = arith.mulf %36, %35 : vector<1x128xf32>
    %38 = arith.addf %28, %37 : vector<1x128xf32>
    %39 = vector.extract_strided_slice %21 {offsets = [2, 0], sizes = [1, 128], strides = [1, 1]} : vector<5x128xf32> to vector<1x128xf32>
    %40 = arith.addf %30, %39 : vector<1x128xf32>
    %41 = vector.extract_strided_slice %9 {offsets = [2, 0], sizes = [1, 128], strides = [1, 1]} : vector<5x128xf32> to vector<1x128xf32>
    %42 = vector.extract_strided_slice %3 {offsets = [2, 0], sizes = [1, 128], strides = [1, 1]} : vector<5x128xf32> to vector<1x128xf32>
    %43 = arith.mulf %41, %42 : vector<1x128xf32>
    %44 = arith.addf %34, %43 : vector<1x128xf32>
    %45 = vector.extract_strided_slice %9 {offsets = [2, 0], sizes = [1, 128], strides = [1, 1]} : vector<5x128xf32> to vector<1x128xf32>
    %cst_5 = arith.constant 2.000000e-01 : f32
    %46 = vector.broadcast %cst_5 : f32 to vector<1x128xf32>
    %47 = arith.mulf %46, %45 : vector<1x128xf32>
    %48 = arith.addf %38, %47 : vector<1x128xf32>
    %49 = vector.extract_strided_slice %21 {offsets = [3, 0], sizes = [1, 128], strides = [1, 1]} : vector<5x128xf32> to vector<1x128xf32>
    %50 = arith.addf %40, %49 : vector<1x128xf32>
    %51 = vector.extract_strided_slice %9 {offsets = [3, 0], sizes = [1, 128], strides = [1, 1]} : vector<5x128xf32> to vector<1x128xf32>
    %52 = vector.extract_strided_slice %3 {offsets = [3, 0], sizes = [1, 128], strides = [1, 1]} : vector<5x128xf32> to vector<1x128xf32>
    %53 = arith.mulf %51, %52 : vector<1x128xf32>
    %54 = arith.addf %44, %53 : vector<1x128xf32>
    %55 = vector.extract_strided_slice %9 {offsets = [3, 0], sizes = [1, 128], strides = [1, 1]} : vector<5x128xf32> to vector<1x128xf32>
    %cst_6 = arith.constant 3.500000e-01 : f32
    %56 = vector.broadcast %cst_6 : f32 to vector<1x128xf32>
    %57 = arith.mulf %56, %55 : vector<1x128xf32>
    %58 = arith.addf %48, %57 : vector<1x128xf32>
    %59 = vector.extract_strided_slice %21 {offsets = [4, 0], sizes = [1, 128], strides = [1, 1]} : vector<5x128xf32> to vector<1x128xf32>
    %60 = arith.addf %50, %59 : vector<1x128xf32>
    %61 = vector.extract_strided_slice %9 {offsets = [4, 0], sizes = [1, 128], strides = [1, 1]} : vector<5x128xf32> to vector<1x128xf32>
    %62 = vector.extract_strided_slice %3 {offsets = [4, 0], sizes = [1, 128], strides = [1, 1]} : vector<5x128xf32> to vector<1x128xf32>
    %63 = arith.mulf %61, %62 : vector<1x128xf32>
    %64 = arith.addf %54, %63 : vector<1x128xf32>
    %65 = vector.extract_strided_slice %9 {offsets = [4, 0], sizes = [1, 128], strides = [1, 1]} : vector<5x128xf32> to vector<1x128xf32>
    %cst_7 = arith.constant 3.500000e-01 : f32
    %66 = vector.broadcast %cst_7 : f32 to vector<1x128xf32>
    %67 = arith.mulf %66, %65 : vector<1x128xf32>
    %68 = arith.addf %58, %67 : vector<1x128xf32>
    %69 = arith.subf %64, %18 : vector<1x128xf32>
    %70 = math.log %60 : vector<1x128xf32>
    %71 = arith.subf %69, %70 : vector<1x128xf32>
    %72 = math.exp %71 : vector<1x128xf32>
    %cst_8 = arith.constant 1.000000e+00 : f32
    %73 = vector.broadcast %cst_8 : f32 to vector<1x128xf32>
    %74 = arith.subf %73, %72 : vector<1x128xf32>
    %75 = arith.mulf %74, %74 : vector<1x128xf32>
    %76 = arith.mulf %68, %75 : vector<1x128xf32>
    %cst_9 = arith.constant 0.000000e+00 : f32
    %77 = vector.broadcast %cst_9 : f32 to vector<1x128xf32>
    %78 = arith.subf %77, %71 : vector<1x128xf32>
    %79 = arith.mulf %76, %78 : vector<1x128xf32>
    %80 = tpu.iota {dimensions = array<i32: 1>} : vector<1x128xi32>
    %c128_i32 = arith.constant 128 : i32
    %81 = arith.muli %arg0, %c128_i32 : i32
    %82 = vector.broadcast %81 : i32 to vector<1x128xi32>
    %83 = arith.addi %80, %82 : vector<1x128xi32>
    %c8_i32 = arith.constant 8 : i32
    %84 = vector.broadcast %c8_i32 : i32 to vector<1x128xi32>
    %85 = arith.cmpi slt, %83, %84 : vector<1x128xi32>
    %86 = arith.extui %85 : vector<1x128xi1> to vector<1x128xi32>
    %87 = arith.sitofp %86 : vector<1x128xi32> to vector<1x128xf32>
    %c0_10 = arith.constant 0 : index
    %c0_11 = arith.constant 0 : index
    %88 = vector.load %arg4[%c0_10, %c0_11] : memref<1x128xf32, #tpu.memory_space<vmem>>, vector<1x128xf32>
    %89 = arith.mulf %79, %87 : vector<1x128xf32>
    %90 = arith.addf %88, %89 : vector<1x128xf32>
    %c0_12 = arith.constant 0 : index
    %c0_13 = arith.constant 0 : index
    %91 = vector.load %arg4[%c0_12, %c0_13] : memref<1x128xf32, #tpu.memory_space<vmem>>, vector<1x128xf32>
    tpu.vector_store %arg4[%c0_12, %c0_13], %90 {strides = array<i32>} : memref<1x128xf32, #tpu.memory_space<vmem>>, vector<1x128xf32>,
    %c0_i32_14 = arith.constant 0 : i32
    %92 = arith.cmpi eq, %arg0, %c0_i32_14 : i32
    %93 = arith.extui %92 : i1 to i32
    %c0_i32_15 = arith.constant 0 : i32
    %94 = arith.cmpi ne, %93, %c0_i32_15 : i32
    scf.if %94 {
      %c0_16 = arith.constant 0 : index
      %c0_17 = arith.constant 0 : index
      %95 = vector.load %arg4[%c0_16, %c0_17] : memref<1x128xf32, #tpu.memory_space<vmem>>, vector<1x128xf32>
      %96 = vector.shape_cast %95 : vector<1x128xf32> to vector<1x1x128xf32>
      %cst_18 = arith.constant dense<0.000000e+00> : vector<1xf32>
      %97 = vector.multi_reduction <add>, %96, %cst_18 [1, 2] : vector<1x1x128xf32> to vector<1xf32>
      %98 = vector.shape_cast %97 : vector<1xf32> to vector<1x1x1xf32>
      %99 = vector.extract %98[0, 0, 0] : f32 from vector<1x1x1xf32>
      %cst_19 = arith.constant 8.000000e+00 : f32
      %100 = arith.divf %99, %cst_19 : f32
      %c0_20 = arith.constant 0 : index
      %c0_21 = arith.constant 0 : index
      %101 = memref.load %arg3[%c0_20, %c0_21] : memref<1x1xf32, #tpu.memory_space<smem>>
      memref.store %100, %arg3[%c0_20, %c0_21] : memref<1x1xf32, #tpu.memory_space<smem>>
    } else {
    }
    return
  }
  func.func @transform_0(%arg0: i32) -> (i32, i32) {
    %c0_i32 = arith.constant 0 : i32
    %c0_i32_0 = arith.constant 0 : i32
    return %c0_i32, %arg0 : i32, i32
  }
  func.func @transform_1(%arg0: i32) -> (i32, i32) {
    %c0_i32 = arith.constant 0 : i32
    %c0_i32_0 = arith.constant 0 : i32
    return %c0_i32, %arg0 : i32, i32
  }
  func.func @transform_2(%arg0: i32) -> (i32, i32) {
    %c0_i32 = arith.constant 0 : i32
    %c0_i32_0 = arith.constant 0 : i32
    %c0_i32_1 = arith.constant 0 : i32
    return %c0_i32, %c0_i32_0 : i32, i32
  }
}

</mosaic_0001>

<bundles_post_ra>
// kernel: tpu_custom_call.1
= control target key start
LH: loop header
LB: loop body
LE: loop exit
PB: predicated region body
PF: predicated region fallthrough
CT: control target
= control target key end

     0   :  { %7 = vsyncpa [#allocation4], 0  ;;  %s261_s0 = inlined_call_operand.hbm [shape: f32[5,128], index: 0, kind: input, shape index: {}]   ;;  %s262_s1 = inlined_call_operand.vmem [shape: s32[1,128], index: 1, kind: input, shape index: {}]   ;;  %s263_s2 = inlined_call_operand.hbm [shape: f32[1,1], index: 2, kind: output, shape index: {}]  }
   0x1   :  { %8 = vsyncpa [#allocation5], 0  ;;  %s213_s9 = smov [#allocation3]   ;;  %s177_s13 = scalar_lea.hbm %s261_s0, 128 }
   0x2   :  { %s15_s10 = sshll.u32 %s213_s9, 4  ;;  %p178_p0 = scmp.ne.s32.totalorder %s261_s0, %s177_s13  ;;  %s16_s10 = int_to_ptr.vmem [resolvable:$true] %s15_s10 }
   0x3   :  { %p181_p1 = scmp.lt.u32.totalorder %s177_s13, %s261_s0 }
   0x5   :  { %p183_p2 = pnand %p181_p1, %p178_p0 }
   0x7   :  { %186 = shalt.err (!%p183_p2)
}
   0x8   :  { %s187_s18 = scalar_lea.vmem %s16_s10, 128  ;;  %p192_p4 = scmp.lt.s32.totalorder %s16_s10, %s16_s10 }
   0x9   :  { %p188_p3 = scmp.ne.s32.totalorder %s16_s10, %s187_s18  ;;  %p193_p5 = scmp.lt.s32.totalorder %s187_s18, %s187_s18 }
   0xb   :  { %p194_p6 = por %p193_p5, %p192_p4 }
   0xd   :  { %p195_p7 = pnand %p194_p6, %p188_p3 }
   0xf   :  { %198 = shalt.err (!%p195_p7)
}
  0x10   :  { %18 = dma.hbm_to_vmem [thread:$0]  %s261_s0, 128, %s16_s10, [#allocation4]  }
  0x11   :  { %209 = dma.done.wait [#allocation4], 128  }
  0x12   :  { %210 = vsyncadd [#allocation4], 4294967168  ;;  %v31_v0 = vlaneseq  ;;  %v214_v1 = vmov 0.0   ;;  %v29_v4 = vld [vmem:[#allocation3] sm:$0x1f]  ;;  %vm133_vm2 = vcmask 1040384  }
  0x13   :  { %28 = vst [vmem:[#allocation2] sm:$0x1] %v214_v1  ;;  %v41_v5 = vrot.slane %v29_v4, 1  ;;  %v44_v6 = vrot.slane %v29_v4, 2  ;;  %v47_v9 = vrot.slane %v29_v4, 3  ;;  %v50_v11 = vrot.slane %v29_v4, 4 }
  0x14   :  { %v118_v2 = vand.u32 127, %v31_v0  ;;  %v32_v7 = vshrl.u32 %v31_v0, 7  ;;  %v163_v17 = vld [vmem:[%s262_s1] ss:$0 sm:$0xff]  ;;  %s199_s25 = scalar_lea.hbm %s263_s2, 16 }
  0x15   :  { %v43_v8 = vmax.f32 %v29_v4, %v41_v5  ;;  %p200_p8 = scmp.ne.s32.totalorder %s263_s2, %s199_s25  ;;  %p203_p9 = scmp.lt.u32.totalorder %s199_s25, %s263_s2 }
  0x16   :  { %vm122_vm0 = vcmp.lt.s32.totalorder %v118_v2, 8  ;;  %v55_v13 = vsub.s32 0, %v32_v7  ;;  %vm37_vm1 = vcmp.eq.s32.totalorder %v32_v7, %v163_v17 }
  0x17   :  { %v243_v3 = vsel %vm122_vm0, 1.0, %v214_v1  ;;  %v46_v10 = vmax.f32 %v43_v8, %v44_v6  ;;  %v164_v19 = vsel %vm37_vm1, 1.0, %v214_v1  ;;  %p205_p10 = pnand %p203_p9, %p200_p8 }
  0x18   :  { %v60_v20 = vmul.f32 %v164_v19, %v29_v4  ;;  %v70_v38 = vmul.f32 0.07, %v164_v19  ;;  %v61_v42 = vmul.f32 0.03, %v164_v19  ;;  %v81_v44 = vmul.f32 0.2, %v164_v19 }
  0x19   :  { %v49_v12 = vmax.f32 %v46_v10, %v47_v9  ;;  %v92_v49 = vmul.f32 0.35, %v164_v19 }
  0x1a   :  { %v67_v22 = vrot.slane %v60_v20, 1  ;;  %v78_v28 = vrot.slane %v60_v20, 2  ;;  %v89_v33 = vrot.slane %v60_v20, 3  ;;  %v100_v36 = vrot.slane %v60_v20, 4  ;;  %v125_v61 = vld [vmem:[#allocation2] sm:$0x1] }
  0x1b   :  { %v52_v14 = vmax.f32 %v49_v12, %v50_v11  ;;  %v72_v43 = vrot.slane %v70_v38, 1  ;;  %v83_v48 = vrot.slane %v81_v44, 2  ;;  %v94_v51 = vrot.slane %v92_v49, 3 }
  0x1c   :  { %v69_v27 = vadd.f32 %v67_v22, %v60_v20  ;;  %v103_v53 = vrot.slane %v92_v49, 4 }
  0x1d   :  { %v56_v15 = vrot.slane %v52_v14, %v55_v13  ;;  %v74_v47 = vadd.f32 %v72_v43, %v61_v42 }
  0x1e   :  { %v80_v32 = vadd.f32 %v78_v28, %v69_v27 }
  0x1f   :  { %v57_v16 = vsub.f32 %v29_v4, %v56_v15  ;;  %v85_v50 = vadd.f32 %v83_v48, %v74_v47 }
  0x20   :  { %v91_v35 = vadd.f32 %v89_v33, %v80_v32 }
  0x21   :  { %v58_v18 = vmul.f32 1.442695, %v57_v16  ;;  %v96_v52 = vadd.f32 %v94_v51, %v85_v50 }
  0x22   :  { %v102_v37 = vadd.f32 %v100_v36, %v91_v35 }
  0x23   :  { %171 = vpow2.f32 %v58_v18  ;;  %v105_v55 = vadd.f32 %v103_v53, %v96_v52 }
  0x24   :  { %v106_v39 = vsub.f32 %v102_v37, %v52_v14 }
  0x2d   :  { %v172_v21 = vpop.eup %171 }
  0x2e   :  { %v63_v23 = vrot.slane %v172_v21, 1  ;;  %v75_v24 = vrot.slane %v172_v21, 2  ;;  %v86_v26 = vrot.slane %v172_v21, 3  ;;  %v97_v30 = vrot.slane %v172_v21, 4 }
  0x30   :  { %v65_v25 = vadd.f32 %v172_v21, %v63_v23 }
  0x32   :  { %v77_v29 = vadd.f32 %v75_v24, %v65_v25 }
  0x34   :  { %v88_v31 = vadd.f32 %v86_v26, %v77_v29 }
  0x36   :  { %v99_v34 = vadd.f32 %v97_v30, %v88_v31 }
  0x38   :  { %173 = vlog2.f32 %v99_v34 }
  0x42   :  { %v174_v40 = vpop.eup %173 }
  0x43   :  { %v108_v41 = vmul.f32 0.6931472, %v174_v40 }
  0x45   :  { %v109_v45 = vsub.f32 %v106_v39, %v108_v41 }
  0x47   :  { %v110_v46 = vmul.f32 1.442695, %v109_v45  ;;  %v115_v58 = vsub.f32 0.0, %v109_v45 }
  0x49   :  { %175 = vpow2.f32 %v110_v46 }
  0x53   :  { %v176_v54 = vpop.eup %175 }
  0x54   :  { %v112_v56 = vsub.f32 1.0, %v176_v54 }
  0x56   :  { %v113_v57 = vmul.f32 %v112_v56, %v112_v56 }
  0x58   :  { %v114_v59 = vmul.f32 %v113_v57, %v105_v55 }
  0x5a   :  { %v116_v60 = vmul.f32 %v115_v58, %v114_v59 }
  0x5c   :  { %v126_v62 = vmul.f32 %v243_v3, %v116_v60 }
  0x5e   :  { %v127_v63 = vadd.f32 %v126_v62, %v125_v61 }
  0x60   :  { %128 = vst [vmem:[#allocation2] sm:$0x1] %v127_v63 }
  0x67   :  { %v132_v0 = vld [vmem:[#allocation2] sm:$0x1] }
  0x68   :  { %v134_v1 = vsel %vm133_vm2, %v132_v0, 0.0 }
  0x69   :  { %135 = vadd.xlane.f32.xlu0 %v134_v1 }
  0xf6   :  { %v136_v2 = vpop.xlane.xlu0 %135 }
  0xf7   :  { %v137_v4 = vrot.slane %v136_v2, 4 }
  0xf9   :  { %v138_v5 = vadd.f32 %v137_v4, %v136_v2 }
  0xfb   :  { %v139_v6 = vrot.slane %v138_v5, 2 }
  0xfd   :  { %v140_v7 = vadd.f32 %v139_v6, %v138_v5 }
  0xff   :  { %v141_v8 = vrot.slane %v140_v7, 1 }
 0x101   :  { %v142_v9 = vadd.f32 %v141_v8, %v140_v7 }
 0x103   :  { %166 = vpush %v142_v9 }
 0x134   :  { %s167_s1 = spop %166 }
 0x135   :  { %s146_s22 = smul.f32 0.125, %s167_s1 }
 0x137   :  { %148 = sst [smem:[#allocation6]] %s146_s22 }
 0x138   :  { %208 = shalt.err (!%p205_p10)
}
 0x139   :  { %s215_s30 = smov [#allocation6]  }
 0x13a   :  { %156 = dma.smem_to_hbm %s215_s30, 16, %s263_s2, [#allocation5]  }
 0x13b   :  { %211 = dma.done.wait [#allocation5], 16  }
 0x13c   :  { %212 = vsyncadd [#allocation5], 4294967280 }
 0x13d   :  { %160 = sfence }
 0x13e   :  { %161 = vsyncpa [#allocation4], 1 }
 0x13f   :  { %162 = vsyncpa [#allocation5], 1 }

</bundles_post_ra>
